<compile_context>
chip_gen: v7x
topology: tpu7x:2x2x1
jax: 0.10.0
libtpu: 0.0.40
codegen_flags: <defaults>
</compile_context>

<pallas_src>
import functools

import jax
import jax.numpy as jnp
import numpy as np
from jax.experimental import pallas as pl
from jax.experimental.pallas import tpu as pltpu

_LANES = 128


def _vmem_capacity_bytes():
    try:
        cap = getattr(pltpu.get_tpu_info(), "vmem_capacity_bytes", None)
        if cap:
            return int(cap)
    except Exception:
        pass
    return 64 << 20  # conservative default (v7x has the smallest VMEM per TC)


def _focal_loss_kernel(*refs, num_classes, gamma, ignore_index, has_alpha,
                       reduce_in_kernel, rows_per_block, total_rows):
    """Focal loss on one [rb, 128] pixel tile.

    refs (in order):
      [alpha_ref]  SMEM [C] f32 class weights (only when has_alpha)
      labels_ref   VMEM [1, 1, rb, 128] int32 labels
      x_ref        VMEM [1, C, rb, 128] logits (any float dtype)
      out_ref      VMEM [1, 1, rb, 128] per-pixel loss        (reduction='none')
                   or   [1, 1, 8, 128] partial stats block    (mean/sum):
                   [0,0] = sum of masked losses, [0,1] = valid-pixel count.
    """
    if has_alpha:
        alpha_ref, labels_ref, x_ref, out_ref = refs
    else:
        labels_ref, x_ref, out_ref = refs
        alpha_ref = None

    C = num_classes
    lab = labels_ref[0, 0]                                    # [rb, 128] int32

    # pass 1: class-axis max in the NATIVE dtype (bf16 VALU on v6e/v7x),
    # single upcast afterwards.
    m = x_ref[0, 0]
    for c in range(1, C):
        m = jnp.maximum(m, x_ref[0, c])
    m = m.astype(jnp.float32)

    # pass 2: exp-sum + gather of x[label] (and alpha[label]) via per-class
    # selects.  Fully unrolled VPU loop over C packed [rb,128] vregs.
    # TODO(synk): for large C (~64+) add an inner 'arbitrary' class-chunk grid
    # axis with flash-style running (m, s, xy, w) scratch instead of unrolling.
    s = jnp.zeros_like(m)                                     # sum_c exp(x_c - m)
    xy = jnp.zeros_like(m)                                    # x[label]
    w = jnp.zeros_like(m) if has_alpha else None              # alpha[label]
    for c in range(C):
        xc = x_ref[0, c].astype(jnp.float32)
        s = s + jnp.exp(xc - m)
        sel = lab == c
        xy = jnp.where(sel, xc, xy)
        if has_alpha:
            w = jnp.where(sel, alpha_ref[c], w)

    lse = jnp.log(s) + m                                      # logsumexp
    log_pt = xy - lse                                         # log p_t
    ce = -(w * log_pt) if has_alpha else -log_pt              # weighted NLL

    if gamma == 0.0:
        loss = ce
    else:
        base = jnp.maximum(1.0 - jnp.exp(log_pt), 0.0)        # (1 - p_t), clamped
        if gamma == 1.0:
            focal = base
        elif gamma == 2.0:
            focal = base * base
        else:
            focal = jnp.power(base, jnp.float32(gamma))
        loss = focal * ce

    valid = lab != ignore_index

    if reduce_in_kernel:
        if total_rows % rows_per_block != 0:
            # Last row tile overruns the array: mask OOB rows so garbage never
            # pollutes the partial loss-sum / valid-count.
            row = jax.lax.broadcasted_iota(jnp.int32, lab.shape, 0)
            valid = valid & ((pl.program_id(1) * rows_per_block + row) < total_rows)
        loss = jnp.where(valid, loss, jnp.float32(0.0))
        tile_sum = jnp.sum(loss)
        tile_cnt = jnp.sum(valid.astype(jnp.float32))
        r_iota = jax.lax.broadcasted_iota(jnp.int32, (8, _LANES), 0)
        l_iota = jax.lax.broadcasted_iota(jnp.int32, (8, _LANES), 1)
        out_ref[0, 0] = jnp.where(
            (r_iota == 0) & (l_iota == 0), tile_sum,
            jnp.where((r_iota == 0) & (l_iota == 1), tile_cnt, jnp.float32(0.0)))
    else:
        out_ref[0, 0] = jnp.where(valid, loss, jnp.float32(0.0))


def focal_loss(x, y, *, alpha=None, gamma=0.0, reduction="mean",
               ignore_index=-100, tile_pixels=131072, vmem_budget_bytes=None):
    """x: [N, C, *spatial] float logits, y: [N, *spatial] int labels."""
    if reduction not in ("mean", "sum", "none"):
        raise ValueError('Reduction must be one of: "mean", "sum", "none".')

    N, C = x.shape[0], x.shape[1]
    HW = 1
    for d in x.shape[2:]:
        HW *= d

    reduce_in_kernel = reduction in ("mean", "sum")
    has_alpha = alpha is not None

    xr = x.reshape(N, C, HW)                       # free reshape, NO transpose
    yr = y.reshape(N, 1, HW).astype(jnp.int32)

    HWp = ((HW + _LANES - 1) // _LANES) * _LANES
    if HWp != HW:
        # TODO(synk): lane-unaligned spatial size falls back to an XLA-side pad
        # of x (an extra HBM pass over the logits); a future version should mask
        # the tail lanes in-kernel against the global pixel index instead.
        xr = jnp.pad(xr, ((0, 0), (0, 0), (0, HWp - HW)))
        yr = jnp.pad(yr, ((0, 0), (0, 0), (0, HWp - HW)),
                     constant_values=ignore_index)

    R = HWp // _LANES
    xr = xr.reshape(N, C, R, _LANES)
    yr = yr.reshape(N, 1, R, _LANES)

    # --- pick row-tile size (pixels per grid step = rb * 128) ----------------
    x_bytes = x.dtype.itemsize
    sub = max(8, 32 // max(1, x_bytes))            # 8 f32 / 16 bf16 / 32 int8 rows
    out_pix_bytes = 0 if reduce_in_kernel else 4   # per-pixel out only for 'none'
    phys_vmem = _vmem_capacity_bytes()
    if vmem_budget_bytes is None:
        vmem_budget_bytes = min(28 << 20, phys_vmem // 2)

    # double-buffered bytes per 128-pixel row: logits + int32 labels (+ f32 out)
    bytes_per_row = 2 * _LANES * (C * x_bytes + 4 + out_pix_bytes)
    rb = max(sub, tile_pixels // _LANES)
    rb = min(rb, max(sub, vmem_budget_bytes // bytes_per_row))
    if rb >= R:
        rb = R                                     # full extent is always legal
    else:
        rb = max(sub, (rb // sub) * sub)           # sublane-aligned partial tiles
    # keep >= 2 grid steps so both v7x TensorCores get sharded work
    if N * pl.cdiv(R, rb) < 2 and R >= 2 * sub:
        rb = max(sub, ((R + 1) // 2 // sub) * sub)
    num_tiles = pl.cdiv(R, rb)

    # explicit scoped-VMEM limit: double-buffered footprint + headroom
    block_bytes = rb * _LANES * (C * x_bytes + 4 + out_pix_bytes)
    if reduce_in_kernel:
        block_bytes += 8 * _LANES * 4
    vmem_limit = int(min(max(2 * block_bytes + (4 << 20), 16 << 20),
                         phys_vmem * 3 // 4))

    kernel = functools.partial(
        _focal_loss_kernel, num_classes=C, gamma=float(gamma),
        ignore_index=int(ignore_index), has_alpha=has_alpha,
        reduce_in_kernel=reduce_in_kernel, rows_per_block=rb, total_rows=R)

    in_specs = []
    args = []
    if has_alpha:
        in_specs.append(pl.BlockSpec(memory_space=pltpu.MemorySpace.SMEM))
        args.append(jnp.asarray(alpha, jnp.float32).reshape(C))
    in_specs += [
        pl.BlockSpec((1, 1, rb, _LANES), lambda n, i: (n, 0, i, 0)),   # labels
        pl.BlockSpec((1, C, rb, _LANES), lambda n, i: (n, 0, i, 0)),   # logits
    ]
    args += [yr, xr]

    if reduce_in_kernel:
        out_shape = jax.ShapeDtypeStruct((N, num_tiles, 8, _LANES), jnp.float32)
        out_spec = pl.BlockSpec((1, 1, 8, _LANES), lambda n, i: (n, i, 0, 0))
    else:
        out_shape = jax.ShapeDtypeStruct((N, 1, R, _LANES), jnp.float32)
        out_spec = pl.BlockSpec((1, 1, rb, _LANES), lambda n, i: (n, 0, i, 0))

    out = pl.pallas_call(
        kernel,
        out_shape=out_shape,
        grid=(N, num_tiles),
        in_specs=in_specs,
        out_specs=out_spec,
        compiler_params=pltpu.CompilerParams(
            dimension_semantics=("parallel", "parallel"),
            vmem_limit_bytes=vmem_limit),
    )(*args)

    if reduce_in_kernel:
        total = jnp.sum(out[:, :, 0, 0])
        if reduction == "sum":
            return total
        cnt = jnp.sum(out[:, :, 0, 1])
        return jnp.where(cnt > 0, total / cnt, jnp.float32(0.0))

    # reduction == "none"
    per_pix = out.reshape(N, HWp)[:, :HW]          # [N, HW] f32, 0 at ignored
    # TODO(synk): PyTorch returns a 1-D tensor of only the unignored elements
    # (data-dependent shape); we return per-pixel losses with zeros at ignored
    # positions instead.
    return (per_pix.reshape((N,) + x.shape[2:]) if x.ndim > 2
            else per_pix[:, 0])


def _focal_loss_ref(x, y, *, alpha=None, gamma=0.0, reduction="mean",
                    ignore_index=-100):
    """Plain-JAX replica of the PyTorch FocalLoss forward."""
    C = x.shape[1]
    if x.ndim > 2:
        perm = (0,) + tuple(range(2, x.ndim)) + (1,)
        xf = jnp.transpose(x, perm).reshape(-1, C)
        yf = y.reshape(-1)
    else:
        xf, yf = x, y.reshape(-1)
    mask = yf != ignore_index
    y_safe = jnp.where(mask, yf, 0)
    logp = jax.nn.log_softmax(xf, axis=-1)
    log_pt = jnp.take_along_axis(logp, y_safe[:, None], axis=-1)[:, 0]
    w = (jnp.ones_like(log_pt) if alpha is None
         else jnp.asarray(alpha, jnp.float32)[y_safe])
    ce = -w * log_pt
    pt = jnp.exp(log_pt)
    focal = jnp.power(1.0 - pt, gamma) if gamma != 0.0 else 1.0
    loss = jnp.where(mask, focal * ce, 0.0)
    if reduction == "mean":
        cnt = jnp.sum(mask.astype(jnp.float32))
        return jnp.where(cnt > 0, jnp.sum(loss) / cnt, 0.0)
    if reduction == "sum":
        return jnp.sum(loss)
    return loss


if __name__ == "__main__":
    key = jax.random.PRNGKey(0)
    k1, k2, k3 = jax.random.split(key, 3)

    N, C, H, W = 2, 4, 16, 16
    x = jax.random.normal(k1, (N, C, H, W), dtype=jnp.float32)
    y = jax.random.randint(k2, (N, H, W), 0, C, dtype=jnp.int32)
    # sprinkle some ignored labels to exercise ignore_index handling
    drop = jax.random.uniform(k3, (N, H, W)) < 0.1
    y = jnp.where(drop, jnp.int32(-100), y)

    # config 1: module defaults (alpha=None, gamma=0, reduction='mean')
    out1 = jax.block_until_ready(focal_loss(x, y))
    ref1 = _focal_loss_ref(x, y)
    np.testing.assert_allclose(np.asarray(out1), np.asarray(ref1),
                               rtol=1e-5, atol=1e-5)

    # config 2: per-class alpha + gamma=2 focal modulation, reduction='sum'
    alpha = jnp.array([0.25, 0.5, 1.0, 0.75], dtype=jnp.float32)
    out2 = jax.block_until_ready(
        focal_loss(x, y, alpha=alpha, gamma=2.0, reduction="sum"))
    ref2 = _focal_loss_ref(x, y, alpha=alpha, gamma=2.0, reduction="sum")
    np.testing.assert_allclose(np.asarray(out2), np.asarray(ref2),
                               rtol=1e-5, atol=1e-5)

    # config 3: reduction='none' path (per-pixel output)
    out3 = jax.block_until_ready(
        focal_loss(x, y, alpha=alpha, gamma=2.0, reduction="none"))
    ref3 = _focal_loss_ref(x, y, alpha=alpha, gamma=2.0,
                           reduction="none").reshape(N, H, W)
    np.testing.assert_allclose(np.asarray(out3), np.asarray(ref3),
                               rtol=1e-5, atol=1e-5)

    # config 4: bf16 logits, single batch, partial last row tile -> exercises
    # native-dtype max pass, in-kernel OOB-row masking and the >=2-steps rule.
    N2, C2, H2, W2 = 1, 3, 40, 64
    xb = jax.random.normal(k1, (N2, C2, H2, W2), jnp.float32).astype(jnp.bfloat16)
    yb = jax.random.randint(k2, (N2, H2, W2), 0, C2, dtype=jnp.int32)
    yb = jnp.where(jax.random.uniform(k3, (N2, H2, W2)) < 0.2, jnp.int32(-100), yb)
    out4 = jax.block_until_ready(
        focal_loss(xb, yb, gamma=2.0, tile_pixels=8 * _LANES))
    ref4 = _focal_loss_ref(xb.astype(jnp.float32), yb, gamma=2.0)
    np.testing.assert_allclose(np.asarray(out4), np.asarray(ref4),
                               rtol=1e-4, atol=1e-4)

    print("KERNEL_OK")
</pallas_src>

<mosaic_0001>
module attributes {stable_mosaic.version = 11 : i64} {
  func.func @_focal_loss_kernel(%arg0: i32, %arg1: i32, %arg2: memref<1x1x2x128xi32, #tpu.memory_space<vmem>>, %arg3: memref<1x4x2x128xf32, #tpu.memory_space<vmem>>, %arg4: memref<1x1x8x128xf32, #tpu.memory_space<vmem>>) attributes {dimension_semantics = [#tpu.dimension_semantics<parallel>, #tpu.dimension_semantics<parallel>], iteration_bounds = array<i64: 2, 1>, scalar_prefetch = 0 : i64, scratch_operands = 0 : i64, tpu.core_type = #tpu.core_type<tc>, window_params = [{transform_indices = @transform_0, window_bounds = array<i64: 1, 1, 2, 128>}, {transform_indices = @transform_1, window_bounds = array<i64: 1, 4, 2, 128>}, {transform_indices = @transform_2, window_bounds = array<i64: 1, 1, 8, 128>}]} {
    %c0 = arith.constant 0 : index
    %c0_0 = arith.constant 0 : index
    %c0_1 = arith.constant 0 : index
    %c0_2 = arith.constant 0 : index
    %0 = vector.load %arg2[%c0, %c0_0, %c0_1, %c0_2] : memref<1x1x2x128xi32, #tpu.memory_space<vmem>>, vector<1x1x2x128xi32>
    %1 = vector.shape_cast %0 : vector<1x1x2x128xi32> to vector<2x128xi32>
    %c0_3 = arith.constant 0 : index
    %c0_4 = arith.constant 0 : index
    %c0_5 = arith.constant 0 : index
    %c0_6 = arith.constant 0 : index
    %2 = vector.load %arg3[%c0_3, %c0_4, %c0_5, %c0_6] : memref<1x4x2x128xf32, #tpu.memory_space<vmem>>, vector<1x1x2x128xf32>
    %3 = vector.shape_cast %2 : vector<1x1x2x128xf32> to vector<2x128xf32>
    %c0_7 = arith.constant 0 : index
    %c1 = arith.constant 1 : index
    %c0_8 = arith.constant 0 : index
    %c0_9 = arith.constant 0 : index
    %4 = vector.load %arg3[%c0_7, %c1, %c0_8, %c0_9] : memref<1x4x2x128xf32, #tpu.memory_space<vmem>>, vector<1x1x2x128xf32>
    %5 = vector.shape_cast %4 : vector<1x1x2x128xf32> to vector<2x128xf32>
    %6 = arith.maximumf %3, %5 : vector<2x128xf32>
    %c0_10 = arith.constant 0 : index
    %c2 = arith.constant 2 : index
    %c0_11 = arith.constant 0 : index
    %c0_12 = arith.constant 0 : index
    %7 = vector.load %arg3[%c0_10, %c2, %c0_11, %c0_12] : memref<1x4x2x128xf32, #tpu.memory_space<vmem>>, vector<1x1x2x128xf32>
    %8 = vector.shape_cast %7 : vector<1x1x2x128xf32> to vector<2x128xf32>
    %9 = arith.maximumf %6, %8 : vector<2x128xf32>
    %c0_13 = arith.constant 0 : index
    %c3 = arith.constant 3 : index
    %c0_14 = arith.constant 0 : index
    %c0_15 = arith.constant 0 : index
    %10 = vector.load %arg3[%c0_13, %c3, %c0_14, %c0_15] : memref<1x4x2x128xf32, #tpu.memory_space<vmem>>, vector<1x1x2x128xf32>
    %11 = vector.shape_cast %10 : vector<1x1x2x128xf32> to vector<2x128xf32>
    %12 = arith.maximumf %9, %11 : vector<2x128xf32>
    %cst = arith.constant 0.000000e+00 : f32
    %13 = vector.broadcast %cst : f32 to vector<2x128xf32>
    %cst_16 = arith.constant 0.000000e+00 : f32
    %14 = vector.broadcast %cst_16 : f32 to vector<2x128xf32>
    %c0_17 = arith.constant 0 : index
    %c0_18 = arith.constant 0 : index
    %c0_19 = arith.constant 0 : index
    %c0_20 = arith.constant 0 : index
    %15 = vector.load %arg3[%c0_17, %c0_18, %c0_19, %c0_20] : memref<1x4x2x128xf32, #tpu.memory_space<vmem>>, vector<1x1x2x128xf32>
    %16 = vector.shape_cast %15 : vector<1x1x2x128xf32> to vector<2x128xf32>
    %17 = arith.subf %16, %12 : vector<2x128xf32>
    %18 = math.exp %17 : vector<2x128xf32>
    %19 = arith.addf %13, %18 : vector<2x128xf32>
    %c0_i32 = arith.constant 0 : i32
    %20 = vector.broadcast %c0_i32 : i32 to vector<2x128xi32>
    %21 = arith.cmpi eq, %1, %20 : vector<2x128xi32>
    %22 = arith.select %21, %16, %14 : vector<2x128xi1>, vector<2x128xf32>
    %c0_21 = arith.constant 0 : index
    %c1_22 = arith.constant 1 : index
    %c0_23 = arith.constant 0 : index
    %c0_24 = arith.constant 0 : index
    %23 = vector.load %arg3[%c0_21, %c1_22, %c0_23, %c0_24] : memref<1x4x2x128xf32, #tpu.memory_space<vmem>>, vector<1x1x2x128xf32>
    %24 = vector.shape_cast %23 : vector<1x1x2x128xf32> to vector<2x128xf32>
    %25 = arith.subf %24, %12 : vector<2x128xf32>
    %26 = math.exp %25 : vector<2x128xf32>
    %27 = arith.addf %19, %26 : vector<2x128xf32>
    %c1_i32 = arith.constant 1 : i32
    %28 = vector.broadcast %c1_i32 : i32 to vector<2x128xi32>
    %29 = arith.cmpi eq, %1, %28 : vector<2x128xi32>
    %30 = arith.select %29, %24, %22 : vector<2x128xi1>, vector<2x128xf32>
    %c0_25 = arith.constant 0 : index
    %c2_26 = arith.constant 2 : index
    %c0_27 = arith.constant 0 : index
    %c0_28 = arith.constant 0 : index
    %31 = vector.load %arg3[%c0_25, %c2_26, %c0_27, %c0_28] : memref<1x4x2x128xf32, #tpu.memory_space<vmem>>, vector<1x1x2x128xf32>
    %32 = vector.shape_cast %31 : vector<1x1x2x128xf32> to vector<2x128xf32>
    %33 = arith.subf %32, %12 : vector<2x128xf32>
    %34 = math.exp %33 : vector<2x128xf32>
    %35 = arith.addf %27, %34 : vector<2x128xf32>
    %c2_i32 = arith.constant 2 : i32
    %36 = vector.broadcast %c2_i32 : i32 to vector<2x128xi32>
    %37 = arith.cmpi eq, %1, %36 : vector<2x128xi32>
    %38 = arith.select %37, %32, %30 : vector<2x128xi1>, vector<2x128xf32>
    %c0_29 = arith.constant 0 : index
    %c3_30 = arith.constant 3 : index
    %c0_31 = arith.constant 0 : index
    %c0_32 = arith.constant 0 : index
    %39 = vector.load %arg3[%c0_29, %c3_30, %c0_31, %c0_32] : memref<1x4x2x128xf32, #tpu.memory_space<vmem>>, vector<1x1x2x128xf32>
    %40 = vector.shape_cast %39 : vector<1x1x2x128xf32> to vector<2x128xf32>
    %41 = arith.subf %40, %12 : vector<2x128xf32>
    %42 = math.exp %41 : vector<2x128xf32>
    %43 = arith.addf %35, %42 : vector<2x128xf32>
    %c3_i32 = arith.constant 3 : i32
    %44 = vector.broadcast %c3_i32 : i32 to vector<2x128xi32>
    %45 = arith.cmpi eq, %1, %44 : vector<2x128xi32>
    %46 = arith.select %45, %40, %38 : vector<2x128xi1>, vector<2x128xf32>
    %47 = math.log %43 : vector<2x128xf32>
    %48 = arith.addf %47, %12 : vector<2x128xf32>
    %49 = arith.subf %46, %48 : vector<2x128xf32>
    %cst_33 = arith.constant 0.000000e+00 : f32
    %50 = vector.broadcast %cst_33 : f32 to vector<2x128xf32>
    %51 = arith.subf %50, %49 : vector<2x128xf32>
    %c-100_i32 = arith.constant -100 : i32
    %52 = vector.broadcast %c-100_i32 : i32 to vector<2x128xi32>
    %53 = arith.cmpi ne, %1, %52 : vector<2x128xi32>
    %cst_34 = arith.constant 0.000000e+00 : f32
    %54 = vector.broadcast %cst_34 : f32 to vector<2x128xf32>
    %55 = arith.select %53, %51, %54 : vector<2x128xi1>, vector<2x128xf32>
    %56 = vector.shape_cast %55 : vector<2x128xf32> to vector<1x2x128xf32>
    %cst_35 = arith.constant dense<0.000000e+00> : vector<1xf32>
    %57 = vector.multi_reduction <add>, %56, %cst_35 [1, 2] : vector<1x2x128xf32> to vector<1xf32>
    %58 = vector.shape_cast %57 : vector<1xf32> to vector<1x1x1xf32>
    %59 = vector.extract %58[0, 0, 0] : f32 from vector<1x1x1xf32>
    %60 = arith.extui %53 : vector<2x128xi1> to vector<2x128xi32>
    %61 = arith.sitofp %60 : vector<2x128xi32> to vector<2x128xf32>
    %62 = vector.shape_cast %61 : vector<2x128xf32> to vector<1x2x128xf32>
    %cst_36 = arith.constant dense<0.000000e+00> : vector<1xf32>
    %63 = vector.multi_reduction <add>, %62, %cst_36 [1, 2] : vector<1x2x128xf32> to vector<1xf32>
    %64 = vector.shape_cast %63 : vector<1xf32> to vector<1x1x1xf32>
    %65 = vector.extract %64[0, 0, 0] : f32 from vector<1x1x1xf32>
    %66 = tpu.iota {dimensions = array<i32: 0>} : vector<8x128xi32>
    %67 = tpu.iota {dimensions = array<i32: 1>} : vector<8x128xi32>
    %c0_i32_37 = arith.constant 0 : i32
    %68 = vector.broadcast %c0_i32_37 : i32 to vector<8x128xi32>
    %69 = arith.cmpi eq, %66, %68 : vector<8x128xi32>
    %c0_i32_38 = arith.constant 0 : i32
    %70 = vector.broadcast %c0_i32_38 : i32 to vector<8x128xi32>
    %71 = arith.cmpi eq, %67, %70 : vector<8x128xi32>
    %72 = arith.andi %69, %71 : vector<8x128xi1>
    %c0_i32_39 = arith.constant 0 : i32
    %73 = vector.broadcast %c0_i32_39 : i32 to vector<8x128xi32>
    %74 = arith.cmpi eq, %66, %73 : vector<8x128xi32>
    %c1_i32_40 = arith.constant 1 : i32
    %75 = vector.broadcast %c1_i32_40 : i32 to vector<8x128xi32>
    %76 = arith.cmpi eq, %67, %75 : vector<8x128xi32>
    %77 = arith.andi %74, %76 : vector<8x128xi1>
    %cst_41 = arith.constant 0.000000e+00 : f32
    %78 = vector.broadcast %65 : f32 to vector<8x128xf32>
    %79 = vector.broadcast %cst_41 : f32 to vector<8x128xf32>
    %80 = arith.select %77, %78, %79 : vector<8x128xi1>, vector<8x128xf32>
    %81 = vector.broadcast %59 : f32 to vector<8x128xf32>
    %82 = arith.select %72, %81, %80 : vector<8x128xi1>, vector<8x128xf32>
    %c0_42 = arith.constant 0 : index
    %c0_43 = arith.constant 0 : index
    %c0_44 = arith.constant 0 : index
    %c0_45 = arith.constant 0 : index
    %83 = vector.load %arg4[%c0_42, %c0_43, %c0_44, %c0_45] : memref<1x1x8x128xf32, #tpu.memory_space<vmem>>, vector<1x1x8x128xf32>
    %84 = vector.shape_cast %83 : vector<1x1x8x128xf32> to vector<8x128xf32>
    %85 = vector.shape_cast %82 : vector<8x128xf32> to vector<1x1x8x128xf32>
    tpu.vector_store %arg4[%c0_42, %c0_43, %c0_44, %c0_45], %85 {strides = array<i32>} : memref<1x1x8x128xf32, #tpu.memory_space<vmem>>, vector<1x1x8x128xf32>,
    return
  }
  func.func @transform_0(%arg0: i32, %arg1: i32) -> (i32, i32, i32, i32) {
    %c0_i32 = arith.constant 0 : i32
    %c0_i32_0 = arith.constant 0 : i32
    %c0_i32_1 = arith.constant 0 : i32
    return %arg0, %c0_i32, %arg1, %c0_i32_0 : i32, i32, i32, i32
  }
  func.func @transform_1(%arg0: i32, %arg1: i32) -> (i32, i32, i32, i32) {
    %c0_i32 = arith.constant 0 : i32
    %c0_i32_0 = arith.constant 0 : i32
    %c0_i32_1 = arith.constant 0 : i32
    return %arg0, %c0_i32, %arg1, %c0_i32_0 : i32, i32, i32, i32
  }
  func.func @transform_2(%arg0: i32, %arg1: i32) -> (i32, i32, i32, i32) {
    %c0_i32 = arith.constant 0 : i32
    %c0_i32_0 = arith.constant 0 : i32
    %c0_i32_1 = arith.constant 0 : i32
    return %arg0, %arg1, %c0_i32, %c0_i32_0 : i32, i32, i32, i32
  }
}

</mosaic_0001>

<bundles_post_ra>
// kernel: tpu_custom_call.1
= control target key start
LH: loop header
LB: loop body
LE: loop exit
PB: predicated region body
PF: predicated region fallthrough
CT: control target
= control target key end

     0   :  { %7 = vsyncpa [#allocation3], 0  ;;  %s923_s0 = inlined_call_operand.hbm [shape: s32[2,1,2,128], index: 0, kind: input, shape index: {}]   ;;  %s924_s1 = inlined_call_operand.hbm [shape: f32[2,4,2,128], index: 1, kind: input, shape index: {}]   ;;  %s925_s2 = inlined_call_operand.hbm [shape: f32[2,1,8,128], index: 2, kind: output, shape index: {}]  }
   0x1   :  { %9 = vsyncpa [#allocation3 + $0x1], 0 }
   0x2   :  { %10 = vsyncpa [#allocation6], 0 }
   0x3   :  { %12 = vsyncpa [#allocation6 + $0x1], 0 }
   0x4   :  { %13 = vsyncpa [#allocation4], 0 }
   0x5   :  { %15 = vsyncpa [#allocation4 + $0x1], 0  ;;  %s693_s9 = smov 0   ;;  %s695_s10 = smov 0  }
   0x6   :  { %s697_s11 = smov 0   ;;  %s699_s12 = smov 0  }
   0x7   :  { %s701_s13 = smov 0   ;;  %s703_s14 = smov 0  }
   0x8 LB: > { %s418_s15 = sadd.s32 4294967295, %s670_s14   ;;  %s419_s16 = sadd.s32 4294967294, %s670_s14   ;;  %s670_s14 = sphi %s703_s14, %s21_s14   ;;  %s666_s13 = sphi %s701_s13, %s944_s13   ;;  %s662_s12 = sphi %s699_s12, %s943_s12   ;;  %s658_s11 = sphi %s697_s11, %s942_s11   ;;  %s654_s10 = sphi %s695_s10, %s941_s10   ;;  %s650_s9 = sphi %s693_s9, %s940_s9  }
   0x9   : > { %s33_s17 = sadd.s32 1, %s666_s13  ;;  %s42_s18 = sadd.s32 1, %s658_s11 }
   0xa   : > { %p35_p0 = scmp.ge.s32.totalorder %s33_s17, 2  ;;  %p49_p1 = scmp.ne.s32.totalorder %s658_s11, %s654_s10 }
   0xb   : > { %p50_p2 = scmp.eq.s32.totalorder %s670_s14, 0  ;;  %p55_p3 = scmp.ne.s32.totalorder %s654_s10, %s650_s9 }
   0xc   : > { %s946_s17 = smov (%p35_p0, %s33_s17), 0  ;;  %p56_p5 = scmp.eq.s32.totalorder %s418_s15, 0 }
   0xd   : > { %p734_p4 = por %p50_p2, %p49_p1  ;;  %s37_s20 = ssub.s32 %s666_s13, %s946_s17 }
   0xe   : > { %p109_p6 = scmp.eq.s32.totalorder %s418_s15, 1  ;;  %p40_p7 = scmp.eq.s32.totalorder %s37_s20, 0 }
   0xf   : > { %p740_p8 = por %p56_p5, %p55_p3  ;;  %p115_p10 = scmp.eq.s32.totalorder %s419_s16, 1 }
  0x10   : > { %p744_p9 = por %p109_p6, %p49_p1  ;;  %p461_p13 = scmp.lt.s32.totalorder %s670_s14, 2 }
  0x11   : > { %s929_s21 = scalar_select %p740_p8, 1, 0 }
  0x12   : > { %s930_s22 = scalar_select %p744_p9, 1, 0 }
  0x13   : > { %s749_s23 = scalar_select %p40_p7, %s658_s11, %s42_s18  }
  0x14   : > { %p751_p11 = por %p115_p10, %p55_p3  ;;  %s758_s25 = sand.u32 1, %s658_s11  }
  0x15   : > { %s422_s26 = sshll.u32 %s758_s25, 1  ;;  %s423_s27 = sshll.u32 %s666_s13, 5 }
  0x16   : > { %s931_s24 = scalar_select %p751_p11, 1, 0 }
  0x17   : > { %s765_s30 = scalar_lea.hbm %s923_s0, %s423_s27  ;;  %s139_s3 = scalar_lea.vmem [#allocation2], %s422_s26 }
  0x18   : > { %s147_s4 = sshll.u32 %s139_s3, 4  ;;  %p771_p0 = pnand %p461_p13, %p734_p4  ;;  %s767_s4 = int_to_ptr.vmem [resolvable:$true] %s147_s4 }
  0x19   : > { %s136_s6 = scalar_lea.sflag [#allocation3], %s758_s25  ;;  %s524_s7 = scalar_lea.hbm %s765_s30, 32 }
  0x1a   : > { %p525_p3 = scmp.ne.s32.totalorder %s765_s30, %s524_s7  ;;  %p526_p5 = pneg %p771_p0 }
  0x1b   : > { %s529_s16 = scalar_lea.hbm %s923_s0, 64  ;;  %p530_p4 = scmp.lt.u32.totalorder %s765_s30, %s923_s0 }
  0x1c   : > { %p527_p6 = pnand %p526_p5, %p525_p3  ;;  %p531_p10 = scmp.lt.u32.totalorder %s529_s16, %s524_s7 }
  0x1d   : > { %p533_p12 = scmp.lt.u32.totalorder %s524_s7, %s765_s30 }
  0x1e   : > { %p528_p7 = pneg %p527_p6  ;;  %p532_p13 = por %p531_p10, %p530_p4 }
  0x20   : > { %p534_p1 = por %p533_p12, %p532_p13 }
  0x22   : > { %p535_p2 = pnand %p534_p1, %p528_p7 }
  0x24   : > { %538 = shalt.err (!%p535_p2)
}
  0x25   : > { %s539_s20 = scalar_lea.vmem %s767_s4, 32  ;;  %s672_s26 = smov [#allocation2]  }
  0x26   : > { %p540_p3 = scmp.ne.s32.totalorder %s767_s4, %s539_s20  ;;  %s544_s27 = sshll.u32 %s672_s26, 4  ;;  %s545_s27 = int_to_ptr.vmem [resolvable:$false] %s544_s27 }
  0x27   : > { %s546_s28 = scalar_lea.vmem %s545_s27, 64  ;;  %p547_p9 = scmp.lt.s32.totalorder %s767_s4, %s545_s27 }
  0x28   : > { %p542_p6 = pnand %p540_p3, %p526_p5  ;;  %p548_p4 = scmp.lt.s32.totalorder %s546_s28, %s539_s20 }
  0x2a   : > { %p543_p11 = pneg %p542_p6  ;;  %p549_p10 = por %p548_p4, %p547_p9 }
  0x2c   : > { %p550_p12 = pnand %p549_p10, %p543_p11 }
  0x2e   : > { %553 = shalt.err (!%p550_p12)
}
  0x2f   : > { %453 = dma.hbm_to_vmem [thread:$0]  (!%p771_p0), %s765_s30, 32, %s767_s4, %s136_s6  }
  0x30   : > { %p933_p1 = scmp.lt.s32.totalorder %s670_s14, 3  ;;  %p934_p2 = scmp.ge.s32.totalorder %s670_s14, 1 }
  0x31   : > { %s424_s3 = sshll.u32 %s758_s25, 3  ;;  %s439_s7 = sshll.u32 %s666_s13, 7 }
  0x32   : > { %p807_p7 = pnand %p934_p2, %p933_p1  ;;  %s816_s16 = scalar_lea.hbm %s924_s1, %s439_s7 }
  0x33   : > { %s158_s18 = scalar_lea.vmem [#allocation5], %s424_s3  ;;  %s155_s30 = scalar_lea.sflag [#allocation6], %s758_s25 }
  0x34   : > { %s166_s19 = sshll.u32 %s158_s18, 4  ;;  %s554_s4 = scalar_lea.hbm %s816_s16, 128  ;;  %s818_s19 = int_to_ptr.vmem [resolvable:$true] %s166_s19 }
  0x35   : > { %p555_p9 = scmp.ne.s32.totalorder %s816_s16, %s554_s4  ;;  %s559_s26 = scalar_lea.hbm %s924_s1, 256 }
  0x36   : > { %p560_p3 = scmp.lt.u32.totalorder %s816_s16, %s924_s1  ;;  %p561_p6 = scmp.lt.u32.totalorder %s559_s26, %s554_s4 }
  0x37   : > { %p557_p11 = pnand %p555_p9, %p526_p5  ;;  %p563_p10 = scmp.lt.u32.totalorder %s554_s4, %s816_s16 }
  0x38   : > { %p562_p4 = por %p561_p6, %p560_p3 }
  0x39   : > { %p558_p13 = pneg %p557_p11 }
  0x3a   : > { %p564_p12 = por %p563_p10, %p562_p4 }
  0x3c   : > { %p565_p1 = pnand %p564_p12, %p558_p13 }
  0x3e   : > { %568 = shalt.err (!%p565_p1)
}
  0x3f   : > { %s569_s3 = scalar_lea.vmem %s818_s19, 128  ;;  %s673_s7 = smov [#allocation5]  }
  0x40   : > { %p570_p2 = scmp.ne.s32.totalorder %s818_s19, %s569_s3  ;;  %s574_s8 = sshll.u32 %s673_s7, 4  ;;  %s575_s8 = int_to_ptr.vmem [resolvable:$false] %s574_s8 }
  0x41   : > { %s576_s15 = scalar_lea.vmem %s575_s8, 256  ;;  %p577_p8 = scmp.lt.s32.totalorder %s818_s19, %s575_s8 }
  0x42   : > { %p572_p9 = pnand %p570_p2, %p526_p5  ;;  %p578_p3 = scmp.lt.s32.totalorder %s576_s15, %s569_s3 }
  0x44   : > { %p573_p11 = pneg %p572_p9  ;;  %p579_p6 = por %p578_p3, %p577_p8 }
  0x46   : > { %p580_p4 = pnand %p579_p6, %p573_p11 }
  0x48   : > { %583 = shalt.err (!%p580_p4)
}
  0x49   : > { %s674_s18 = smov 32   ;;  %s675_s4 = smov 2  }
  0x4a   : > { %456 = dma.hbm_to_vmem [thread:$0]  (!%p771_p0), %s816_s16, 128, %s818_s19, %s155_s30, %s674_s18, %s674_s18, %s675_s4  }
  0x4b   : > { %178 = sbr.rel (%p807_p7) target bundleno = 361 (0x169), region = 28  ;;  %s849_s6 = sand.u32 (!%p807_p7), 1, %s654_s10  }
  0x4c   : > { %s428_s20 = sshll.u32 (!%p807_p7), %s849_s6, 1  ;;  %s181_s26 = scalar_lea.sflag (!%p807_p7), [#allocation3], %s849_s6 }
  0x4d   : > { %s853_s27 = scalar_lea.vmem (!%p807_p7), [#allocation2], %s428_s20  ;;  %p936_p8 = scmp.ne.s32.totalorder (!%p807_p7), %s929_s21, 0 }
  0x52   : > { %637 = dma.done.wait (%p936_p8), %s181_s26, 32  }
  0x53   : > { %639 = vsyncadd (%p936_p8), %s181_s26, 4294967264  ;;  %s429_s25 = sshll.u32 %s849_s6, 3  ;;  %s190_s5 = scalar_lea.sflag [#allocation6], %s849_s6 }
  0x54   : > { %s193_s29 = scalar_lea.vmem [#allocation5], %s429_s25 }
  0x55   : > { %641 = dma.done.wait (%p936_p8), %s190_s5, 128  }
  0x56   : > { %643 = vsyncadd (%p936_p8), %s190_s5, 4294967168  ;;  %v220_v0 = vld [vmem:[%s193_s29] sm:$0x3]  ;;  %v431_v1 = vld [vmem:[%s193_s29 + $0x2] sm:$0x3]  ;;  %vm261_vm5 = vcmask 1041408   ;;  %v284_v51 = vlaneseq }
  0x57   : > { %v223_v2 = vmax.f32 %v220_v0, %v431_v1  ;;  %v432_v3 = vld [vmem:[%s193_s29 + $0x4] sm:$0x3]  ;;  %v433_v4 = vld [vmem:[%s193_s29 + $0x6] sm:$0x3]  ;;  %v219_v21 = vld [vmem:[%s853_s27] sm:$0x3] }
  0x58   : > { %vm234_vm0 = vcmp.eq.s32.totalorder %v219_v21, 0  ;;  %vm240_vm1 = vcmp.eq.s32.totalorder %v219_v21, 1  ;;  %vm246_vm2 = vcmp.eq.s32.totalorder %v219_v21, 2  ;;  %vm252_vm3 = vcmp.eq.s32.totalorder %v219_v21, 3  ;;  %s436_s21 = sshll.u32 %s662_s12, 7  ;;  %s218_s19 = scalar_lea.vmem [#allocation7], %s429_s25 }
  0x59   : > { %v226_v5 = vmax.f32 %v223_v2, %v432_v3  ;;  %v235_v23 = vsel %vm234_vm0, %v220_v0, 0.0  ;;  %vm259_vm4 = vcmp.ne.s32.totalorder %v219_v21, 4294967196  ;;  %v676_v33 = vmov 0.0   ;;  %s313_s30 = sshll.u32 %s218_s19, 4  ;;  %s874_s8 = scalar_lea.hbm %s925_s2, %s436_s21  ;;  %s876_s30 = int_to_ptr.vmem [resolvable:$true] %s313_s30 }
  0x5a   : > { %v241_v24 = vsel %vm240_vm1, %v431_v1, %v235_v23  ;;  %v434_v34 = vsel %vm259_vm4, 1.0, %v676_v33  ;;  %v285_v52 = vshrl.u32 %v284_v51, 7  ;;  %v287_v53 = vand.u32 127, %v284_v51  ;;  %s299_s12 = scalar_lea.sflag [#allocation4], %s849_s6  ;;  %s584_s15 = scalar_lea.vmem %s876_s30, 128 }
  0x5b   : > { %v229_v6 = vmax.f32 %v226_v5, %v433_v4  ;;  %v247_v25 = vsel %vm246_vm2, %v432_v3, %v241_v24  ;;  %v274_v36 = vsel %vm261_vm5, %v434_v34, 0.0  ;;  %p585_p0 = scmp.ne.s32.totalorder %s876_s30, %s584_s15  ;;  %p937_p5 = scmp.ne.s32.totalorder %s930_s22, 0 }
  0x5c   : > { %v253_v28 = vsel %vm252_vm3, %v433_v4, %v247_v25  ;;  %vm288_vm6 = vcmp.eq.s32.totalorder %v285_v52, 0  ;;  %vm291_vm7 = vcmp.eq.s32.totalorder %v287_v53, 1  ;;  %vm289_vm8 = vcmp.eq.s32.totalorder %v287_v53, 0  ;;  %s677_s18 = smov [#allocation7]  }
  0x5d   : > { %v230_v7 = vsub.f32 %v220_v0, %v229_v6  ;;  %v236_v8 = vsub.f32 %v431_v1, %v229_v6  ;;  %v242_v9 = vsub.f32 %v432_v3, %v229_v6  ;;  %v248_v10 = vsub.f32 %v433_v4, %v229_v6  ;;  %vm292_vm9 = vmand %vm288_vm6, %vm291_vm7  ;;  %p586_p7 = pnand %p585_p0, %p937_p5  ;;  %s588_s4 = sshll.u32 %s677_s18, 4  ;;  %s589_s4 = int_to_ptr.vmem [resolvable:$false] %s588_s4 }
  0x5e   : > { %vm290_vm10 = vmand %vm288_vm6, %vm289_vm8  ;;  %s590_s20 = scalar_lea.vmem %s589_s4, 256  ;;  %p591_p10 = scmp.lt.s32.totalorder %s876_s30, %s589_s4 }
  0x5f   : > { %v231_v11 = vmul.f32 1.442695, %v230_v7  ;;  %v237_v12 = vmul.f32 1.442695, %v236_v8  ;;  %v243_v13 = vmul.f32 1.442695, %v242_v9  ;;  %p587_p13 = pneg %p586_p7  ;;  %p592_p12 = scmp.lt.s32.totalorder %s590_s20, %s584_s15 }
  0x60   : > { %v249_v14 = vmul.f32 1.442695, %v248_v10 }
  0x61   : > { %514 = vpow2.f32 %v231_v11  ;;  %p593_p1 = por %p592_p12, %p591_p10 }
  0x62   : > { %516 = vpow2.f32 %v237_v12 }
  0x63   : > { %518 = vpow2.f32 %v243_v13  ;;  %p594_p2 = pnand %p593_p1, %p587_p13 }
  0x64   : > { %520 = vpow2.f32 %v249_v14 }
  0x6b   : > { %v515_v15 = vpop.eup %514 }
  0x6c   : > { %v517_v16 = vpop.eup %516 }
  0x6d   : > { %v519_v17 = vpop.eup %518  ;;  %v239_v18 = vadd.f32 %v517_v16, %v515_v15 }
  0x6e   : > { %v521_v19 = vpop.eup %520 }
  0x6f   : > { %v245_v20 = vadd.f32 %v519_v17, %v239_v18 }
  0x71   : > { %v251_v22 = vadd.f32 %v521_v19, %v245_v20 }
  0x73   : > { %522 = vlog2.f32 %v251_v22 }
  0x7d   : > { %v523_v26 = vpop.eup %522 }
  0x7e   : > { %v255_v27 = vmul.f32 0.6931472, %v523_v26 }
  0x80   : > { %v256_v29 = vadd.f32 %v255_v27, %v229_v6 }
  0x82   : > { %v257_v30 = vsub.f32 %v253_v28, %v256_v29 }
  0x84   : > { %v258_v31 = vsub.f32 0.0, %v257_v30 }
  0x86   : > { %v260_v32 = vsel %vm259_vm4, %v258_v31, 0.0 }
  0x87   : > { %v262_v35 = vsel %vm261_vm5, %v260_v32, 0.0 }
  0x88   : > { %263 = vadd.xlane.f32.xlu0 %v262_v35 }
  0x8c   : > { %275 = vadd.xlane.f32.xlu0 %v274_v36 }
 0x115   : > { %v264_v37 = vpop.xlane.xlu0 %263 }
 0x116   : > { %v265_v38 = vrot.slane %v264_v37, 4 }
 0x118   : > { %v266_v39 = vadd.f32 %v265_v38, %v264_v37 }
 0x119   : > { %v276_v40 = vpop.xlane.xlu0 %275 }
 0x11a   : > { %v267_v41 = vrot.slane %v266_v39, 2  ;;  %v277_v42 = vrot.slane %v276_v40, 4 }
 0x11c   : > { %v278_v43 = vadd.f32 %v277_v42, %v276_v40  ;;  %v268_v44 = vadd.f32 %v267_v41, %v266_v39 }
 0x11e   : > { %v279_v45 = vrot.slane %v278_v43, 2  ;;  %v269_v46 = vrot.slane %v268_v44, 1 }
 0x120   : > { %v280_v47 = vadd.f32 %v279_v45, %v278_v43  ;;  %v270_v48 = vadd.f32 %v269_v46, %v268_v44 }
 0x122   : > { %440 = vpush %v270_v48  ;;  %v281_v49 = vrot.slane %v280_v47, 1 }
 0x124   : > { %v282_v50 = vadd.f32 %v281_v49, %v280_v47 }
 0x126   : > { %442 = vpush %v282_v50 }
 0x153   : > { %s441_s16 = spop %440 }
 0x154   : > { %v295_v55 = vstv %s441_s16 }
 0x157   : > { %s443_s28 = spop %442 }
 0x158   : > { %v293_v54 = vstv %s443_s28 }
 0x159   : > { %v294_v56 = vsel %vm292_vm9, %v293_v54, 0.0 }
 0x15a   : > { %v296_v57 = vsel %vm290_vm10, %v295_v55, %v294_v56 }
 0x15b   : > { %297 = vst [vmem:[%s218_s19] sm:$0xff] %v296_v57 }
 0x15c   : > { %597 = shalt.err (!%p594_p2)
}
 0x15d   : > { %s598_s6 = scalar_lea.hbm %s874_s8, 128  ;;  %s602_s25 = scalar_lea.hbm %s925_s2, 256 }
 0x15e   : > { %p599_p9 = scmp.ne.s32.totalorder %s874_s8, %s598_s6  ;;  %p603_p6 = scmp.lt.u32.totalorder %s874_s8, %s925_s2 }
 0x15f   : > { %p604_p4 = scmp.lt.u32.totalorder %s602_s25, %s598_s6  ;;  %p606_p0 = scmp.lt.u32.totalorder %s598_s6, %s874_s8 }
 0x160   : > { %p600_p11 = pnand %p599_p9, %p937_p5 }
 0x161   : > { %p605_p8 = por %p604_p4, %p603_p6 }
 0x162   : > { %p601_p3 = pneg %p600_p11 }
 0x163   : > { %p607_p7 = por %p606_p0, %p605_p8 }
 0x165   : > { %p608_p13 = pnand %p607_p7, %p601_p3 }
 0x167   : > { %611 = shalt.err (!%p608_p13)
}
 0x168   : > { %448 = dma.vmem_to_hbm [thread:$0]  (%p937_p5), %s876_s30, 128, %s874_s8, %s299_s12  }
 0x169 PF: > { %s325_s21 = sand.u32 1, %s650_s9   ;;  %p938_p10 = scmp.ne.s32.totalorder %s931_s24, 0 }
 0x16a   : > { %p939_p12 = scmp.ge.s32.totalorder %s670_s14, 2  ;;  %s326_s16 = scalar_lea.sflag [#allocation4], %s325_s21 }
 0x16c   : > { %p458_p1 = pnand %p939_p12, %p938_p10 }
 0x16e   : > { %645 = dma.done.wait (!%p458_p1), %s326_s16, 128  }
 0x16f   : > { %647 = vsyncadd (!%p458_p1), %s326_s16, 4294967168  ;;  %s21_s14 = sadd.s32 1, %s670_s14   ;;  %s940_s9 = smov %s654_s10 }
 0x170   : > { %p18_p2 = scmp.ge.s32.totalorder %s21_s14, 4   ;;  %s941_s10 = smov %s658_s11 }
 0x171   : > { %s942_s11 = smov %s749_s23  ;;  %s943_s12 = smov %s666_s13 }
 0x172   : > { %s944_s13 = smov %s946_s17  ;;  %20 = sbr.rel (!%p18_p2) target bundleno = 8 (0x8), region = 89 }
 0x179   :  { %331 = vsyncpa [#allocation3], 1 }
 0x17a   :  { %333 = vsyncpa [#allocation3 + $0x1], 1 }
 0x17b   :  { %334 = vsyncpa [#allocation6], 1 }
 0x17c   :  { %336 = vsyncpa [#allocation6 + $0x1], 1 }
 0x17d   :  { %337 = vsyncpa [#allocation4], 1 }
 0x17e   :  { %339 = vsyncpa [#allocation4 + $0x1], 1 }

</bundles_post_ra>
